<compile_context>
chip_gen: v7x
topology: tpu7x:2x2x1
jax: 0.10.0
libtpu: 0.0.40
codegen_flags: <defaults>
</compile_context>

<pallas_src>
import jax
import jax.numpy as jnp
from jax.experimental import pallas as pl
from jax.experimental.pallas import tpu as pltpu


def actor_kernel(x_ref, w1_ref, b1_ref, w2_ref, b2_ref, w3_ref, b3_ref, o_ref):
    # Whole layer stack fused: intermediates never leave VMEM.
    x = x_ref[...].astype(jnp.bfloat16)

    h1 = jnp.dot(x, w1_ref[...], preferred_element_type=jnp.float32) + b1_ref[...]
    h1 = jnp.maximum(h1, 0.0)

    h2 = jnp.dot(h1.astype(jnp.bfloat16), w2_ref[...],
                 preferred_element_type=jnp.float32) + b2_ref[...]
    h2 = jnp.maximum(h2, 0.0)

    h3 = jnp.dot(h2.astype(jnp.bfloat16), w3_ref[...],
                 preferred_element_type=jnp.float32) + b3_ref[...]
    o_ref[...] = jnp.tanh(h3)


def _round_up(x, m):
    return ((x + m - 1) // m) * m


def actor_forward(obs, params):
    """obs: (B, obs_dim) f32. params: dict of (in, out) weights + (1, out) biases."""
    B, obs_dim = obs.shape
    h1_dim = params["w1"].shape[1]
    h2_dim = params["w2"].shape[1]
    action_dim = params["w3"].shape[1]

    # Lane-dense output: pad the last layer's output features to >=128.
    n_pad = max(128, _round_up(action_dim, 128))
    w3 = jnp.pad(params["w3"], ((0, 0), (0, n_pad - action_dim)))
    b3 = jnp.pad(params["b3"], ((0, 0), (0, n_pad - action_dim)))

    # bf16 weights for the MXU; biases stay f32 (added to the f32 accumulator).
    w1 = params["w1"].astype(jnp.bfloat16)
    w2 = params["w2"].astype(jnp.bfloat16)
    w3 = w3.astype(jnp.bfloat16)
    b1, b2 = params["b1"], params["b2"]

    # Batch tile: 256 rows (fills the 256-row MXU on v6e/v7x) when the batch
    # is large; otherwise just round the batch up to 8 sublanes.
    TB = 256 if B >= 256 else _round_up(B, 8)
    B_pad = pl.cdiv(B, TB) * TB
    obs_p = jnp.pad(obs, ((0, B_pad - B), (0, 0))) if B_pad != B else obs

    grid = (B_pad // TB,)

    weight_spec = lambda shape: pl.BlockSpec(shape, lambda i: (0, 0))

    flops = 2 * B_pad * (obs_dim * h1_dim + h1_dim * h2_dim + h2_dim * n_pad)
    bytes_accessed = (
        obs_p.size * 4
        + (w1.size + w2.size + w3.size) * 2
        + (b1.size + b2.size + b3.size) * 4
        + B_pad * n_pad * 4
    )
    cost = pl.CostEstimate(
        flops=flops,
        transcendentals=B_pad * n_pad,
        bytes_accessed=bytes_accessed,
    )

    out = pl.pallas_call(
        actor_kernel,
        out_shape=jax.ShapeDtypeStruct((B_pad, n_pad), jnp.float32),
        grid=grid,
        in_specs=[
            pl.BlockSpec((TB, obs_dim), lambda i: (i, 0)),
            weight_spec(w1.shape), weight_spec(b1.shape),
            weight_spec(w2.shape), weight_spec(b2.shape),
            weight_spec(w3.shape), weight_spec(b3.shape),
        ],
        out_specs=pl.BlockSpec((TB, n_pad), lambda i: (i, 0)),
        compiler_params=pltpu.CompilerParams(
            dimension_semantics=("parallel",),
        ),
        cost_estimate=cost,
    )(obs_p, w1, b1, w2, b2, w3, b3)

    return out[:B, :action_dim]


def init_actor_params(key, obs_dim, action_dim):
    """Deterministic init matching nn.Linear's U(-1/sqrt(fan_in), 1/sqrt(fan_in)).
    Weights stored as (in_features, out_features) for the kernel (y = x @ W + b)."""
    ks = jax.random.split(key, 6)

    def linear(kw, kb, fan_in, fan_out):
        bound = 1.0 / jnp.sqrt(fan_in)
        w = jax.random.uniform(kw, (fan_in, fan_out), jnp.float32, -bound, bound)
        b = jax.random.uniform(kb, (1, fan_out), jnp.float32, -bound, bound)
        return w, b

    w1, b1 = linear(ks[0], ks[1], obs_dim, 512)
    w2, b2 = linear(ks[2], ks[3], 512, 128)
    w3, b3 = linear(ks[4], ks[5], 128, action_dim)
    return {"w1": w1, "b1": b1, "w2": w2, "b2": b2, "w3": w3, "b3": b3}


def actor_ref(obs, params):
    """Pure-JAX reference using the same bf16-operand / f32-accumulate recipe."""
    w1 = params["w1"].astype(jnp.bfloat16)
    w2 = params["w2"].astype(jnp.bfloat16)
    w3 = params["w3"].astype(jnp.bfloat16)
    h1 = jnp.maximum(
        jnp.dot(obs.astype(jnp.bfloat16), w1, preferred_element_type=jnp.float32)
        + params["b1"], 0.0)
    h2 = jnp.maximum(
        jnp.dot(h1.astype(jnp.bfloat16), w2, preferred_element_type=jnp.float32)
        + params["b2"], 0.0)
    h3 = (jnp.dot(h2.astype(jnp.bfloat16), w3, preferred_element_type=jnp.float32)
          + params["b3"])
    return jnp.tanh(h3)


if __name__ == "__main__":
    B, OBS_DIM, ACTION_DIM = 2, 16, 4

    key = jax.random.PRNGKey(0)
    k_obs, k_params = jax.random.split(key)

    obs = jax.random.normal(k_obs, (B, OBS_DIM), dtype=jnp.float32)
    params = init_actor_params(k_params, OBS_DIM, ACTION_DIM)

    out = actor_forward(obs, params)
    out = jax.block_until_ready(out)

    ref = actor_ref(obs, params)
    assert out.shape == (B, ACTION_DIM), out.shape
    max_err = jnp.max(jnp.abs(out - ref))
    assert max_err < 2e-3, f"max abs err {max_err}"

    print("KERNEL_OK")
</pallas_src>

<mosaic_0001>
module attributes {stable_mosaic.version = 11 : i64} {
  func.func @actor_kernel(%arg0: i32, %arg1: memref<8x16xf32, #tpu.memory_space<vmem>>, %arg2: memref<16x512xbf16, #tpu.memory_space<vmem>>, %arg3: memref<1x512xf32, #tpu.memory_space<vmem>>, %arg4: memref<512x128xbf16, #tpu.memory_space<vmem>>, %arg5: memref<1x128xf32, #tpu.memory_space<vmem>>, %arg6: memref<128x128xbf16, #tpu.memory_space<vmem>>, %arg7: memref<1x128xf32, #tpu.memory_space<vmem>>, %arg8: memref<8x128xf32, #tpu.memory_space<vmem>>) attributes {dimension_semantics = [#tpu.dimension_semantics<parallel>], iteration_bounds = array<i64: 1>, scalar_prefetch = 0 : i64, scratch_operands = 0 : i64, tpu.core_type = #tpu.core_type<tc>, window_params = [{transform_indices = @transform_0, window_bounds = array<i64: 8, 16>}, {pipeline_mode = #tpu.pipeline_mode<synchronous>, transform_indices = @transform_1, window_bounds = array<i64: 16, 512>}, {pipeline_mode = #tpu.pipeline_mode<synchronous>, transform_indices = @transform_2, window_bounds = array<i64: 1, 512>}, {pipeline_mode = #tpu.pipeline_mode<synchronous>, transform_indices = @transform_3, window_bounds = array<i64: 512, 128>}, {pipeline_mode = #tpu.pipeline_mode<synchronous>, transform_indices = @transform_4, window_bounds = array<i64: 1, 128>}, {pipeline_mode = #tpu.pipeline_mode<synchronous>, transform_indices = @transform_5, window_bounds = array<i64: 128, 128>}, {pipeline_mode = #tpu.pipeline_mode<synchronous>, transform_indices = @transform_6, window_bounds = array<i64: 1, 128>}, {transform_indices = @transform_7, window_bounds = array<i64: 8, 128>}]} {
    %c0 = arith.constant 0 : index
    %c0_0 = arith.constant 0 : index
    %0 = vector.load %arg1[%c0, %c0_0] : memref<8x16xf32, #tpu.memory_space<vmem>>, vector<8x16xf32>
    %1 = arith.truncf %0 : vector<8x16xf32> to vector<8x16xbf16>
    %c0_1 = arith.constant 0 : index
    %c0_2 = arith.constant 0 : index
    %2 = vector.load %arg2[%c0_1, %c0_2] : memref<16x512xbf16, #tpu.memory_space<vmem>>, vector<16x512xbf16>
    %cst = arith.constant dense<0.000000e+00> : vector<8x512xf32>
    %3 = tpu.matmul %1, %2, %cst {dimension_numbers = #tpu.dot_dimension_numbers<[1], [0], [0], [1], [0, 0, 1, 1], [], []>} : vector<8x16xbf16>, vector<16x512xbf16>, vector<8x512xf32> -> vector<8x512xf32>
    %c0_3 = arith.constant 0 : index
    %c0_4 = arith.constant 0 : index
    %4 = vector.load %arg3[%c0_3, %c0_4] : memref<1x512xf32, #tpu.memory_space<vmem>>, vector<1x512xf32>
    %5 = vector.broadcast %4 : vector<1x512xf32> to vector<8x512xf32>
    %6 = arith.addf %3, %5 : vector<8x512xf32>
    %cst_5 = arith.constant 0.000000e+00 : f32
    %7 = vector.broadcast %cst_5 : f32 to vector<8x512xf32>
    %8 = arith.maximumf %6, %7 : vector<8x512xf32>
    %9 = arith.truncf %8 : vector<8x512xf32> to vector<8x512xbf16>
    %c0_6 = arith.constant 0 : index
    %c0_7 = arith.constant 0 : index
    %10 = vector.load %arg4[%c0_6, %c0_7] : memref<512x128xbf16, #tpu.memory_space<vmem>>, vector<512x128xbf16>
    %cst_8 = arith.constant dense<0.000000e+00> : vector<8x128xf32>
    %11 = tpu.matmul %9, %10, %cst_8 {dimension_numbers = #tpu.dot_dimension_numbers<[1], [0], [0], [1], [0, 0, 1, 1], [], []>} : vector<8x512xbf16>, vector<512x128xbf16>, vector<8x128xf32> -> vector<8x128xf32>
    %c0_9 = arith.constant 0 : index
    %c0_10 = arith.constant 0 : index
    %12 = vector.load %arg5[%c0_9, %c0_10] : memref<1x128xf32, #tpu.memory_space<vmem>>, vector<1x128xf32>
    %13 = vector.broadcast %12 : vector<1x128xf32> to vector<8x128xf32>
    %14 = arith.addf %11, %13 : vector<8x128xf32>
    %cst_11 = arith.constant 0.000000e+00 : f32
    %15 = vector.broadcast %cst_11 : f32 to vector<8x128xf32>
    %16 = arith.maximumf %14, %15 : vector<8x128xf32>
    %17 = arith.truncf %16 : vector<8x128xf32> to vector<8x128xbf16>
    %c0_12 = arith.constant 0 : index
    %c0_13 = arith.constant 0 : index
    %18 = vector.load %arg6[%c0_12, %c0_13] : memref<128x128xbf16, #tpu.memory_space<vmem>>, vector<128x128xbf16>
    %cst_14 = arith.constant dense<0.000000e+00> : vector<8x128xf32>
    %19 = tpu.matmul %17, %18, %cst_14 {dimension_numbers = #tpu.dot_dimension_numbers<[1], [0], [0], [1], [0, 0, 1, 1], [], []>} : vector<8x128xbf16>, vector<128x128xbf16>, vector<8x128xf32> -> vector<8x128xf32>
    %c0_15 = arith.constant 0 : index
    %c0_16 = arith.constant 0 : index
    %20 = vector.load %arg7[%c0_15, %c0_16] : memref<1x128xf32, #tpu.memory_space<vmem>>, vector<1x128xf32>
    %21 = vector.broadcast %20 : vector<1x128xf32> to vector<8x128xf32>
    %22 = arith.addf %19, %21 : vector<8x128xf32>
    %23 = math.tanh %22 : vector<8x128xf32>
    %c0_17 = arith.constant 0 : index
    %c0_18 = arith.constant 0 : index
    %24 = vector.load %arg8[%c0_17, %c0_18] : memref<8x128xf32, #tpu.memory_space<vmem>>, vector<8x128xf32>
    tpu.vector_store %arg8[%c0_17, %c0_18], %23 {strides = array<i32>} : memref<8x128xf32, #tpu.memory_space<vmem>>, vector<8x128xf32>,
    return
  }
  func.func @transform_0(%arg0: i32) -> (i32, i32) {
    %c0_i32 = arith.constant 0 : i32
    %c0_i32_0 = arith.constant 0 : i32
    return %arg0, %c0_i32 : i32, i32
  }
  func.func @transform_1(%arg0: i32) -> (i32, i32) {
    %c0_i32 = arith.constant 0 : i32
    %c0_i32_0 = arith.constant 0 : i32
    %c0_i32_1 = arith.constant 0 : i32
    return %c0_i32, %c0_i32_0 : i32, i32
  }
  func.func @transform_2(%arg0: i32) -> (i32, i32) {
    %c0_i32 = arith.constant 0 : i32
    %c0_i32_0 = arith.constant 0 : i32
    %c0_i32_1 = arith.constant 0 : i32
    return %c0_i32, %c0_i32_0 : i32, i32
  }
  func.func @transform_3(%arg0: i32) -> (i32, i32) {
    %c0_i32 = arith.constant 0 : i32
    %c0_i32_0 = arith.constant 0 : i32
    %c0_i32_1 = arith.constant 0 : i32
    return %c0_i32, %c0_i32_0 : i32, i32
  }
  func.func @transform_4(%arg0: i32) -> (i32, i32) {
    %c0_i32 = arith.constant 0 : i32
    %c0_i32_0 = arith.constant 0 : i32
    %c0_i32_1 = arith.constant 0 : i32
    return %c0_i32, %c0_i32_0 : i32, i32
  }
  func.func @transform_5(%arg0: i32) -> (i32, i32) {
    %c0_i32 = arith.constant 0 : i32
    %c0_i32_0 = arith.constant 0 : i32
    %c0_i32_1 = arith.constant 0 : i32
    return %c0_i32, %c0_i32_0 : i32, i32
  }
  func.func @transform_6(%arg0: i32) -> (i32, i32) {
    %c0_i32 = arith.constant 0 : i32
    %c0_i32_0 = arith.constant 0 : i32
    %c0_i32_1 = arith.constant 0 : i32
    return %c0_i32, %c0_i32_0 : i32, i32
  }
  func.func @transform_7(%arg0: i32) -> (i32, i32) {
    %c0_i32 = arith.constant 0 : i32
    %c0_i32_0 = arith.constant 0 : i32
    return %arg0, %c0_i32 : i32, i32
  }
}

</mosaic_0001>

<bundles_post_ra>
// kernel: tpu_custom_call.1
= control target key start
LH: loop header
LB: loop body
LE: loop exit
PB: predicated region body
PF: predicated region fallthrough
CT: control target
= control target key end

     0   :  { %12 = vsyncpa [#allocation3], 0  ;;  %s1120_s0 = inlined_call_operand.hbm [shape: f32[8,16], index: 0, kind: input, shape index: {}]   ;;  %s1121_s1 = inlined_call_operand.hbm [shape: bf16[16,512], index: 1, kind: input, shape index: {}]   ;;  %s1122_s2 = inlined_call_operand.vmem [shape: f32[1,512], index: 2, kind: input, shape index: {}]   ;;  %s1123_s3 = inlined_call_operand.hbm [shape: bf16[512,128], index: 3, kind: input, shape index: {}]   ;;  %s1124_s4 = inlined_call_operand.vmem [shape: f32[1,128], index: 4, kind: input, shape index: {}]   ;;  %s1125_s5 = inlined_call_operand.hbm [shape: bf16[128,128], index: 5, kind: input, shape index: {}]   ;;  %s1126_s6 = inlined_call_operand.vmem [shape: f32[1,128], index: 6, kind: input, shape index: {}]   ;;  %s1127_s7 = inlined_call_operand.hbm [shape: f32[8,128], index: 7, kind: output, shape index: {}]  }
   0x1   :  { %13 = vsyncpa [#allocation6], 0 }
   0x2   :  { %14 = vsyncpa [#allocation9], 0 }
   0x3   :  { %15 = vsyncpa [#allocation4], 0  ;;  %s997_s24 = smov [#allocation5]   ;;  %s879_s28 = scalar_lea.hbm %s1121_s1, 512 }
   0x4   :  { %s31_s25 = sshll.u32 %s997_s24, 4  ;;  %p880_p0 = scmp.ne.s32.totalorder %s1121_s1, %s879_s28  ;;  %s32_s25 = int_to_ptr.vmem [resolvable:$true] %s31_s25 }
   0x5   :  { %p883_p1 = scmp.lt.u32.totalorder %s879_s28, %s1121_s1 }
   0x7   :  { %p885_p2 = pnand %p883_p1, %p880_p0 }
   0x9   :  { %888 = shalt.err (!%p885_p2)
}
   0xa   :  { %s889_s10 = scalar_lea.vmem %s32_s25, 512  ;;  %p894_p4 = scmp.lt.s32.totalorder %s32_s25, %s32_s25 }
   0xb   :  { %p890_p3 = scmp.ne.s32.totalorder %s32_s25, %s889_s10  ;;  %p895_p5 = scmp.lt.s32.totalorder %s889_s10, %s889_s10 }
   0xd   :  { %p896_p6 = por %p895_p5, %p894_p4 }
   0xf   :  { %p897_p7 = pnand %p896_p6, %p890_p3 }
  0x11   :  { %900 = shalt.err (!%p897_p7)
}
  0x12   :  { %s998_s11 = smov 256   ;;  %s999_s12 = smov 16  }
  0x13   :  { %37 = dma.hbm_to_vmem [thread:$0]  %s1121_s1, 512, %s32_s25, [#allocation6], %s998_s11, %s998_s11, %s999_s12  }
  0x14   :  { %s1000_s15 = smov [#allocation2]   ;;  %s1001_s17 = smov [#allocation7]  }
  0x15   :  { %s22_s16 = sshll.u32 %s1000_s15, 4  ;;  %s45_s18 = sshll.u32 %s1001_s17, 4  ;;  %s23_s16 = int_to_ptr.vmem [resolvable:$true] %s22_s16  ;;  %s46_s18 = int_to_ptr.vmem [resolvable:$true] %s45_s18 }
  0x16   :  { %s901_s21 = scalar_lea.hbm %s1120_s0, 128 }
  0x17   :  { %p902_p8 = scmp.ne.s32.totalorder %s1120_s0, %s901_s21  ;;  %p905_p9 = scmp.lt.u32.totalorder %s901_s21, %s1120_s0 }
  0x19   :  { %p907_p10 = pnand %p905_p9, %p902_p8 }
  0x1b   :  { %910 = shalt.err (!%p907_p10)
}
  0x1c   :  { %s911_s1 = scalar_lea.vmem %s23_s16, 128  ;;  %p916_p12 = scmp.lt.s32.totalorder %s23_s16, %s23_s16 }
  0x1d   :  { %p912_p11 = scmp.ne.s32.totalorder %s23_s16, %s911_s1  ;;  %p917_p13 = scmp.lt.s32.totalorder %s911_s1, %s911_s1 }
  0x1f   :  { %p918_p0 = por %p917_p13, %p916_p12 }
  0x21   :  { %p919_p1 = pnand %p918_p0, %p912_p11 }
  0x23   :  { %922 = shalt.err (!%p919_p1)
}
  0x24   :  { %25 = dma.hbm_to_vmem [thread:$0]  %s1120_s0, 128, %s23_s16, [#allocation3]  }
  0x25   :  { %s923_s30 = scalar_lea.hbm %s1123_s3, 4096 }
  0x26   :  { %p924_p2 = scmp.ne.s32.totalorder %s1123_s3, %s923_s30  ;;  %p927_p3 = scmp.lt.u32.totalorder %s923_s30, %s1123_s3 }
  0x28   :  { %p929_p4 = pnand %p927_p3, %p924_p2 }
  0x2a   :  { %932 = shalt.err (!%p929_p4)
}
  0x2b   :  { %s933_s12 = scalar_lea.vmem %s46_s18, 4096  ;;  %p938_p6 = scmp.lt.s32.totalorder %s46_s18, %s46_s18 }
  0x2c   :  { %p934_p5 = scmp.ne.s32.totalorder %s46_s18, %s933_s12  ;;  %p939_p7 = scmp.lt.s32.totalorder %s933_s12, %s933_s12 }
  0x2e   :  { %p940_p8 = por %p939_p7, %p938_p6 }
  0x30   :  { %p941_p9 = pnand %p940_p8, %p934_p5 }
  0x32   :  { %944 = shalt.err (!%p941_p9)
}
  0x33   :  { %s1002_s0 = smov 64   ;;  %s1003_s13 = smov 4  }
  0x34   :  { %51 = dma.hbm_to_vmem [thread:$0]  %s1123_s3, 4096, %s46_s18, [#allocation6], %s1002_s0, %s1002_s0, %s1003_s13  }
  0x35   :  { %s1004_s16 = smov [#allocation8]   ;;  %s945_s21 = scalar_lea.hbm %s1125_s5, 1024 }
  0x36   :  { %s59_s17 = sshll.u32 %s1004_s16, 4  ;;  %p946_p10 = scmp.ne.s32.totalorder %s1125_s5, %s945_s21  ;;  %s60_s17 = int_to_ptr.vmem [resolvable:$true] %s59_s17 }
  0x37   :  { %p949_p11 = scmp.lt.u32.totalorder %s945_s21, %s1125_s5 }
  0x39   :  { %p951_p12 = pnand %p949_p11, %p946_p10 }
  0x3b   :  { %954 = shalt.err (!%p951_p12)
}
  0x3c   :  { %s955_s1 = scalar_lea.vmem %s60_s17, 1024  ;;  %p960_p0 = scmp.lt.s32.totalorder %s60_s17, %s60_s17 }
  0x3d   :  { %p956_p13 = scmp.ne.s32.totalorder %s60_s17, %s955_s1  ;;  %p961_p1 = scmp.lt.s32.totalorder %s955_s1, %s955_s1 }
  0x3f   :  { %p962_p2 = por %p961_p1, %p960_p0 }
  0x41   :  { %p963_p3 = pnand %p962_p2, %p956_p13 }
  0x43   :  { %966 = shalt.err (!%p963_p3)
}
  0x44   :  { %65 = dma.hbm_to_vmem [thread:$0]  %s1125_s5, 1024, %s60_s17, [#allocation9], %s1002_s0, %s1002_s0, %s1003_s13  }
  0x45   :  { %989 = dma.done.wait [#allocation3], 128  }
  0x46   :  { %990 = vsyncadd [#allocation3], 4294967168 }
  0x47   :  { %991 = dma.done.wait [#allocation6], 4608  }
  0x48   :  { %992 = vsyncadd [#allocation6], 4294962688 }
  0x49   :  { %993 = dma.done.wait [#allocation9], 1024  }
  0x4a   :  { %994 = vsyncadd [#allocation9], 4294966272  ;;  %v1005_v0 = vmov 0   ;;  %v831_v1 = vld [vmem:[#allocation5 + $0x4] ss:$16 sps:$4 sm:$0xff]   ;;  %v81_v3 = vld [vmem:[#allocation2] sm:$0xff]  ;;  %v89_v40 = vlaneseq }
  0x4b   :  { %165 = vmatprep.mubr.bf16.mxu1 %v1005_v0  ;;  %v833_v2 = vld [vmem:[#allocation5] ss:$16 sps:$4 sm:$0xff]   ;;  %133 = vmatprep.subr.bf16.mxu1 %v831_v1  ;;  %v82_v4 = vpack.c.bf16 %v81_v3, %v81_v3  ;;  %v834_v5 = vld [vmem:[#allocation5 + $0x8] ss:$16 sps:$4 sm:$0xff]   ;;  %v836_v6 = vld [vmem:[#allocation5 + $0xc] ss:$16 sps:$4 sm:$0xff]  }
  0x4c   :  { %134 = vmatpush1.bf16.msra.mxu1 %v833_v2  ;;  %vm129_vm0 = vcmask 130048   ;;  %v837_v7 = vld [vmem:[#allocation7 + $0x40] sm:$0xff]   ;;  %v839_v9 = vld [vmem:[#allocation7 + $0x48] sm:$0xff]   ;;  %v841_v11 = vld [vmem:[#allocation7 + $0x50] sm:$0xff]   ;;  %v1006_v39 = vmov 0.0   ;;  %v90_v41 = vshrl.u32 %v89_v40, 7 }
  0x4d   :  { %174 = vmatprep.subr.bf16.mxu1 %v836_v6  ;;  %v838_v8 = vld [vmem:[#allocation7] sm:$0xff]   ;;  %746 = vmatprep.subr.bf16.mxu0 %v837_v7  ;;  %v840_v10 = vld [vmem:[#allocation7 + $0x8] sm:$0xff]   ;;  %v843_v13 = vld [vmem:[#allocation7 + $0x10] sm:$0xff]   ;;  %vm1007_vm1 = vmmov 0  }
  0x4e   :  { %747 = vmatpush3.bf16.msra.mxu0 %v838_v8  ;;  %v842_v12 = vld [vmem:[#allocation7 + $0xc0] sm:$0xff]   ;;  %v845_v15 = vld [vmem:[#allocation7 + $0x58] sm:$0xff]   ;;  %v846_v16 = vld [vmem:[#allocation7 + $0xc8] sm:$0xff]   ;;  %v91_v42 = vsub.s32 0, %v90_v41  ;;  %v95_v44 = vsub.s32 1, %v90_v41  ;;  %v99_v50 = vsub.s32 2, %v90_v41 }
  0x4f   :  { %702 = vmatmul.mubr.msk.bf16.vlgmr.msra.gmra.mrb[0].mxu1 %vm129_vm0, %v82_v4  ;;  %748 = vmatprep.subr.bf16.mxu0 %v839_v9  ;;  %v844_v14 = vld [vmem:[#allocation7 + $0x80] sm:$0xff]   ;;  %v847_v17 = vld [vmem:[#allocation7 + $0x18] sm:$0xff]   ;;  %v848_v18 = vld [vmem:[#allocation7 + $0x88] sm:$0xff]   ;;  %v103_v53 = vsub.s32 3, %v90_v41 }
  0x50   :  { %175 = vmatpush1.bf16.msra.mxu1 %v834_v5  ;;  %206 = vmatprep.mubr.bf16.mxu1 %v1005_v0  ;;  %v849_v19 = vld [vmem:[#allocation7 + $0x60] sm:$0xff]   ;;  %v850_v20 = vld [vmem:[#allocation7 + $0xd0] sm:$0xff]   ;;  %v853_v23 = vld [vmem:[#allocation7 + $0x68] sm:$0xff]  }
  0x51   :  { %768 = vmatprep.subr.bf16.mxu1 %v842_v12  ;;  %v851_v21 = vld [vmem:[#allocation7 + $0x20] sm:$0xff]   ;;  %v852_v22 = vld [vmem:[#allocation7 + $0x90] sm:$0xff]   ;;  %v854_v24 = vld [vmem:[#allocation7 + $0xd8] sm:$0xff]  }
  0x52   :  { %749 = vmatpush3.bf16.msra.mxu0 %v840_v10  ;;  %v855_v25 = vld [vmem:[#allocation7 + $0x28] sm:$0xff]   ;;  %v856_v26 = vld [vmem:[#allocation7 + $0x98] sm:$0xff]   ;;  %v857_v27 = vld [vmem:[#allocation7 + $0x70] sm:$0xff]  }
  0x53   :  { %750 = vmatprep.subr.bf16.mxu0 %v841_v11  ;;  %v858_v28 = vld [vmem:[#allocation7 + $0xe0] sm:$0xff]   ;;  %v859_v29 = vld [vmem:[#allocation7 + $0x30] sm:$0xff]   ;;  %v861_v31 = vld [vmem:[#allocation7 + $0x78] sm:$0xff]  }
  0x54   :  { %v860_v30 = vld [vmem:[#allocation7 + $0xa0] sm:$0xff]   ;;  %v862_v32 = vld [vmem:[#allocation7 + $0xe8] sm:$0xff]   ;;  %v863_v33 = vld [vmem:[#allocation7 + $0x38] sm:$0xff]  }
  0x55   :  { %v864_v34 = vld [vmem:[#allocation7 + $0xa8] sm:$0xff]   ;;  %v865_v35 = vld [vmem:[#allocation7 + $0xf0] sm:$0xff]   ;;  %v867_v37 = vld [vmem:[#allocation7 + $0xf8] sm:$0xff]  }
  0x56   :  { %751 = vmatpush3.bf16.msra.mxu0 %v843_v13  ;;  %v866_v36 = vld [vmem:[#allocation7 + $0xb0] sm:$0xff]   ;;  %v868_v38 = vld [vmem:[#allocation7 + $0xb8] sm:$0xff]   ;;  %v869_v60 = vld [vmem:[#allocation8] sm:$0xff]  }
  0x57   :  { %703 = vmatmul.mubr.msk.bf16.vlgmr.msra.gmra.mrb[4].mxu1 %vm129_vm0, %v82_v4  ;;  %752 = vmatprep.subr.bf16.mxu0 %v845_v15  ;;  %v87_v43 = vld [vmem:[%s1122_s2] sm:$0xf]  ;;  %v870_v3 = vld [vmem:[#allocation8 + $0x8] sm:$0xff]   ;;  %v871_v8 = vld [vmem:[#allocation8 + $0x10] sm:$0xff]  }
  0x58   :  { %769 = vmatpush3.bf16.msra.mxu1 %v844_v14  ;;  %v92_v45 = vrot.slane %v87_v43, %v91_v42  ;;  %v96_v46 = vrot.slane %v87_v43, %v95_v44  ;;  %v100_v57 = vrot.slane %v87_v43, %v99_v50  ;;  %v104_v59 = vrot.slane %v87_v43, %v103_v53  ;;  %v872_v10 = vld [vmem:[#allocation8 + $0x18] sm:$0xff]   ;;  %v873_v11 = vld [vmem:[#allocation8 + $0x20] sm:$0xff]   ;;  %v874_v12 = vld [vmem:[#allocation8 + $0x28] sm:$0xff]  }
  0x59   :  { %770 = vmatprep.subr.bf16.mxu1 %v846_v16  ;;  %v875_v13 = vld [vmem:[#allocation8 + $0x30] sm:$0xff]   ;;  %v876_v14 = vld [vmem:[#allocation8 + $0x38] sm:$0xff]  }
  0x5a   :  { %753 = vmatpush3.bf16.msra.mxu0 %v847_v17 }
  0x5b   :  { %754 = vmatprep.subr.bf16.mxu0 %v849_v19 }
  0x5c   :  { %771 = vmatpush3.bf16.msra.mxu1 %v848_v18 }
  0x5d   :  { %772 = vmatprep.subr.bf16.mxu1 %v850_v20  ;;  %v704_v20 = vld [vmem:[%s1124_s4] ss:$0 sm:$0xff]  ;;  %s1008_s4 = smov [#allocation10]  }
  0x5e   :  { %755 = vmatpush3.bf16.msra.mxu0 %v851_v21  ;;  %s687_s30 = sshll.u32 %s1008_s4, 4  ;;  %s688_s30 = int_to_ptr.vmem [resolvable:$true] %s687_s30 }
  0x5f   :  { %756 = vmatprep.subr.bf16.mxu0 %v853_v23  ;;  %s967_s8 = scalar_lea.vmem %s688_s30, 128  ;;  %p972_p5 = scmp.lt.s32.totalorder %s688_s30, %s688_s30 }
  0x60   :  { %773 = vmatpush3.bf16.msra.mxu1 %v852_v22  ;;  %p968_p4 = scmp.ne.s32.totalorder %s688_s30, %s967_s8  ;;  %p973_p6 = scmp.lt.s32.totalorder %s967_s8, %s967_s8 }
  0x61   :  { %774 = vmatprep.subr.bf16.mxu1 %v854_v24 }
  0x62   :  { %757 = vmatpush3.bf16.msra.mxu0 %v855_v25  ;;  %p974_p7 = por %p973_p6, %p972_p5 }
  0x63   :  { %758 = vmatprep.subr.bf16.mxu0 %v857_v27 }
  0x64   :  { %775 = vmatpush3.bf16.msra.mxu1 %v856_v26  ;;  %p975_p8 = pnand %p974_p7, %p968_p4 }
  0x65   :  { %776 = vmatprep.subr.bf16.mxu1 %v858_v28 }
  0x66   :  { %759 = vmatpush3.bf16.msra.mxu0 %v859_v29 }
  0x67   :  { %760 = vmatprep.subr.bf16.mxu0 %v861_v31 }
  0x68   :  { %777 = vmatpush3.bf16.msra.mxu1 %v860_v30  ;;  %v737_v30 = vld [vmem:[%s1126_s6] ss:$0 sm:$0xff] }
  0x69   :  { %778 = vmatprep.subr.bf16.mxu1 %v862_v32 }
  0x6a   :  { %761 = vmatpush3.bf16.msra.mxu0 %v863_v33 }
  0x6b   :  { %799 = vmatprep.subr.bf16.mxu0 %v1006_v39 }
  0x6c   :  { %779 = vmatpush3.bf16.msra.mxu1 %v864_v34 }
  0x6d   :  { %780 = vmatprep.subr.bf16.mxu1 %v865_v35 }
  0x70   :  { %781 = vmatpush3.bf16.msra.mxu1 %v866_v36 }
  0x71   :  { %782 = vmatprep.subr.bf16.mxu1 %v867_v37 }
  0x74   :  { %783 = vmatpush3.bf16.msra.mxu1 %v868_v38 }
 0x122   :  { %v167_v47 = vpop.f32.mrb[0].mxu1 }
 0x123   :  { %v168_v48 = vadd.f32 %v167_v47, %v92_v45  ;;  %v169_v49 = vpop.f32.mrb[1].mxu1 }
 0x124   :  { %v170_v51 = vadd.f32 %v169_v49, %v96_v46  ;;  %v171_v52 = vpop.f32.mrb[2].mxu1 }
 0x125   :  { %v215_v54 = vmax.f32 %v168_v48, 0.0  ;;  %v172_v55 = vpop.f32.mrb[3].mxu1 }
 0x126   :  { %v216_v56 = vmax.f32 %v170_v51, 0.0 }
 0x127   :  { %v219_v61 = vpack.c.bf16 %v215_v54, %v215_v54 }
 0x128   :  { %v220_v58 = vpack.c.bf16 %v216_v56, %v216_v56 }
 0x12a   :  { %v208_v62 = vpop.f32.mrb[4].mxu1  ;;  %518 = vmatprep.mubr.bf16.mxu0 %v220_v58 }
 0x12b   :  { %v209_v63 = vadd.f32 %v208_v62, %v100_v57  ;;  %v210_v0 = vpop.f32.mrb[5].mxu1  ;;  %519 = vmatmul.mubr.bf16.vlgmr.msra.gmra.mrb[0].mxu0 %v219_v61 }
 0x12c   :  { %v211_v1 = vadd.f32 %v210_v0, %v104_v59  ;;  %v212_v2 = vpop.f32.mrb[6].mxu1  ;;  %800 = vmatpush3.bf16.msra.mxu0 %v869_v60  ;;  %815 = vmatprep.mubr.msk.bf16.mxu0 %vm1007_vm1, %v1006_v39 }
 0x12d   :  { %v217_v4 = vmax.f32 %v209_v63, 0.0  ;;  %v213_v5 = vpop.f32.mrb[7].mxu1  ;;  %801 = vmatprep.subr.bf16.mxu0 %v1006_v39 }
 0x12e   :  { %v218_v6 = vmax.f32 %v211_v1, 0.0 }
 0x12f   :  { %v221_v9 = vpack.c.bf16 %v217_v4, %v217_v4 }
 0x130   :  { %v222_v7 = vpack.c.bf16 %v218_v6, %v218_v6  ;;  %802 = vmatpush3.bf16.msra.mxu0 %v870_v3 }
 0x131   :  { %803 = vmatprep.subr.bf16.mxu0 %v1006_v39 }
 0x132   :  { %558 = vmatprep.mubr.bf16.mxu1 %v222_v7 }
 0x133   :  { %559 = vmatmul.mubr.bf16.vlgmr.msra.gmra.mrb[8].mxu1 %v221_v9 }
 0x134   :  { %804 = vmatpush3.bf16.msra.mxu0 %v871_v8 }
 0x135   :  { %805 = vmatprep.subr.bf16.mxu0 %v1006_v39 }
 0x138   :  { %806 = vmatpush3.bf16.msra.mxu0 %v872_v10 }
 0x139   :  { %807 = vmatprep.subr.bf16.mxu0 %v1006_v39 }
 0x13c   :  { %808 = vmatpush3.bf16.msra.mxu0 %v873_v11 }
 0x13d   :  { %809 = vmatprep.subr.bf16.mxu0 %v1006_v39 }
 0x140   :  { %810 = vmatpush3.bf16.msra.mxu0 %v874_v12 }
 0x141   :  { %811 = vmatprep.subr.bf16.mxu0 %v1006_v39 }
 0x144   :  { %812 = vmatpush3.bf16.msra.mxu0 %v875_v13 }
 0x145   :  { %813 = vmatprep.subr.bf16.mxu0 %v1006_v39 }
 0x148   :  { %814 = vmatpush3.bf16.msra.mxu0 %v876_v14 }
 0x1fe   :  { %v762_v15 = vpop.f32.mrb[0].mxu0 }
 0x1ff   :  { %v763_v16 = vpop.f32.mrb[1].mxu0 }
 0x200   :  { %v764_v17 = vadd.f32 %v763_v16, %v762_v15  ;;  %v765_v18 = vpop.f32.mrb[2].mxu0 }
 0x201   :  { %v766_v19 = vpop.f32.mrb[3].mxu0 }
 0x202   :  { %v521_v23 = vadd.f32 %v764_v17, %v704_v20 }
 0x206   :  { %v784_v21 = vpop.f32.mrb[8].mxu1 }
 0x207   :  { %v785_v22 = vpop.f32.mrb[9].mxu1 }
 0x208   :  { %v786_v24 = vadd.f32 %v785_v22, %v784_v21  ;;  %v787_v25 = vpop.f32.mrb[10].mxu1 }
 0x209   :  { %v788_v26 = vpop.f32.mrb[11].mxu1 }
 0x20a   :  { %v561_v27 = vadd.f32 %v786_v24, %v521_v23 }
 0x20c   :  { %v566_v28 = vmax.f32 %v561_v27, 0.0 }
 0x20e   :  { %v567_v29 = vpack.c.bf16 %v566_v28, %v566_v28 }
 0x210   :  { %816 = vmatmul.mubr.bf16.vlgmr.msra.gmra.mrb[4].mxu0 %v567_v29 }
 0x2e3   :  { %v673_v31 = vpop.f32.mrb[4].mxu0 }
 0x2e4   :  { %v674_v32 = vadd.f32 %v737_v30, %v673_v31  ;;  %v817_v33 = vpop.f32.mrb[5].mxu0 }
 0x2e5   :  { %v676_v34 = vpop.f32.mrb[6].mxu0 }
 0x2e6   :  { %877 = vtanh.f32 %v674_v32  ;;  %v818_v35 = vpop.f32.mrb[7].mxu0 }
 0x2f0   :  { %v878_v36 = vpop.eup %877 }
 0x2f1   :  { %680 = vst [vmem:[#allocation10] sm:$0xff] %v878_v36 }
 0x2f2   :  { %978 = shalt.err (!%p975_p8)
}
 0x2f3   :  { %s979_s10 = scalar_lea.hbm %s1127_s7, 128 }
 0x2f4   :  { %p980_p9 = scmp.ne.s32.totalorder %s1127_s7, %s979_s10  ;;  %p983_p10 = scmp.lt.u32.totalorder %s979_s10, %s1127_s7 }
 0x2f6   :  { %p985_p11 = pnand %p983_p10, %p980_p9 }
 0x2f8   :  { %988 = shalt.err (!%p985_p11)
}
 0x2f9   :  { %690 = dma.vmem_to_hbm [thread:$0]  %s688_s30, 128, %s1127_s7, [#allocation4]  }
 0x2fa   :  { %995 = dma.done.wait [#allocation4], 128  }
 0x2fb   :  { %996 = vsyncadd [#allocation4], 4294967168 }
 0x2fc   :  { %694 = vsyncpa [#allocation3], 1 }
 0x2fd   :  { %695 = vsyncpa [#allocation6], 1 }
 0x2fe   :  { %696 = vsyncpa [#allocation9], 1 }
 0x2ff   :  { %697 = vsyncpa [#allocation4], 1 }

</bundles_post_ra>
